<compile_context>
chip_gen: v5e
topology: v5e:2x2
jax: 0.10.0
libtpu: 0.0.40
codegen_flags: <defaults>
</compile_context>

<pallas_src>
import jax
import jax.numpy as jnp
from jax.experimental import pallas as pl
from jax.experimental.pallas import tpu as pltpu

LANE = 128            # padded hidden width (lanes)
SUBLANE = 8           # f32 sublane granularity (rows)
NUM_LAYERS = 7
HIDDEN_SIZES = (64, 64, 96, 96, 64, 64)
MAX_BATCH_TILE = 2048


# ----------------------------- Pallas kernel -------------------------------

def _make_kernel(state_pad, action_size, num_splits):
    """Builds the whole-MLP kernel for one batch tile.

    x_ref: (TB, state_pad) f32      w_ref: (7, 128, 128) dot dtype
    b_ref: (7, 1, 128) f32          o_ref: (TB, action_size) f32
    """

    def kernel(x_ref, w_ref, b_ref, o_ref):
        tb = x_ref.shape[0]
        rows = tb // num_splits

        # Independent batch sub-tiles: the scheduler overlaps one half's MXU
        # drain / bias+ReLU (VPU) with the other half's matmul push.
        hs = [x_ref[pl.ds(s * rows, rows), :].astype(w_ref.dtype)
              for s in range(num_splits)]

        for layer in range(NUM_LAYERS):
            # Layer 0 contracts only over the real (sublane-padded) input features.
            w = w_ref[0, :state_pad, :] if layer == 0 else w_ref[layer]
            b = b_ref[layer]
            nxt = []
            for h in hs:
                y = jnp.dot(h, w, preferred_element_type=jnp.float32) + b
                if layer < NUM_LAYERS - 1:
                    y = jnp.maximum(y, 0.0).astype(w_ref.dtype)
                nxt.append(y)
            hs = nxt

        # Store only the real action lanes (output array is (TB, action_size)).
        for s in range(num_splits):
            o_ref[pl.ds(s * rows, rows), :] = hs[s][:, :action_size].astype(o_ref.dtype)

    return kernel


# --------------------------- Parameter packing ------------------------------

def prepare_qnet_params(params, *, dot_dtype=jnp.float32):
    """Pack per-layer (W[in,out], b[out]) into zero-padded stacked arrays.

    Returns (w_all [7,128,128] dot_dtype, b_all [7,1,128] f32).  Zero padding is
    numerically exact: padded input features are 0 and padded output lanes stay 0
    through every layer (and are never stored).
    """
    assert len(params) == NUM_LAYERS
    max_dim = max(max(w.shape) for (w, _) in params)
    assert max_dim <= LANE, "feature dims above 128 would need a wider pad"
    w_all = jnp.zeros((NUM_LAYERS, LANE, LANE), dtype=jnp.float32)
    b_all = jnp.zeros((NUM_LAYERS, 1, LANE), dtype=jnp.float32)
    for i, (w, b) in enumerate(params):
        fi, fo = w.shape
        w_all = w_all.at[i, :fi, :fo].set(w.astype(jnp.float32))
        b_all = b_all.at[i, 0, :fo].set(b.astype(jnp.float32))
    return w_all.astype(dot_dtype), b_all


# --------------------------- Tile selection ----------------------------------

def _num_tensorcores():
    """Best-effort TensorCore count of the local device (v7x megacore => 2)."""
    try:
        kind = (jax.devices()[0].device_kind or "").lower()
    except Exception:
        return 1
    return 2 if "v7" in kind else 1


def _choose_batch_tile(batch):
    cores = _num_tensorcores()
    # One grid step per TensorCore only when each core gets >=128 rows;
    # otherwise a single step (grid steps are pure overhead on 1-TC chips).
    n_tiles = cores if (cores >= 2 and batch >= cores * LANE) else 1
    tile = -(-batch // n_tiles)                       # ceil
    tile = -(-tile // SUBLANE) * SUBLANE              # round up to sublanes
    tile = min(max(tile, SUBLANE), MAX_BATCH_TILE)    # cap huge batches
    return tile


# ------------------------------ Wrapper -------------------------------------

def qnet_forward(x, w_all, b_all, action_size, *, batch_tile=None):
    """x: (B, state_size) f32.  Returns (B, action_size) f32."""
    B, state_size = x.shape
    state_pad = min(LANE, -(-state_size // SUBLANE) * SUBLANE)

    if batch_tile is None:
        batch_tile = _choose_batch_tile(B)
    batch_tile = max(SUBLANE, (batch_tile // SUBLANE) * SUBLANE)
    n_tiles = pl.cdiv(B, batch_tile)
    Bp = n_tiles * batch_tile

    # Minimal host-side padding: rows to the batch tile, features to a sublane
    # multiple (no-op when B and state_size already fit, e.g. state_size == 8).
    x_in = x.astype(jnp.float32)
    if Bp != B or state_pad != state_size:
        x_in = jnp.pad(x_in, ((0, Bp - B), (0, state_pad - state_size)))

    num_splits = 2 if (batch_tile >= 16 and batch_tile % 16 == 0) else 1
    kernel = _make_kernel(state_pad, action_size, num_splits)

    out = pl.pallas_call(
        kernel,
        out_shape=jax.ShapeDtypeStruct((Bp, action_size), jnp.float32),
        grid_spec=pltpu.PrefetchScalarGridSpec(
            num_scalar_prefetch=0,
            grid=(n_tiles,),
            in_specs=[
                pl.BlockSpec((batch_tile, state_pad), lambda i: (i, 0)),   # streams
                pl.BlockSpec(w_all.shape, lambda i: (0, 0, 0)),            # resident
                pl.BlockSpec(b_all.shape, lambda i: (0, 0, 0)),            # resident
            ],
            out_specs=pl.BlockSpec((batch_tile, action_size), lambda i: (i, 0)),
        ),
        compiler_params=pltpu.CompilerParams(
            dimension_semantics=("parallel",)),
    )(x_in, w_all, b_all)

    return out[:B] if Bp != B else out


# --------------------------- Parameter init ---------------------------------

def init_qnet_params(key, state_size, action_size):
    """PyTorch nn.Linear-style init U(-1/sqrt(fan_in), +1/sqrt(fan_in)).

    W is (in_features, out_features) so the kernel computes x @ W + b.
    """
    sizes = [state_size, *HIDDEN_SIZES, action_size]
    params = []
    for i in range(len(sizes) - 1):
        fan_in, fan_out = sizes[i], sizes[i + 1]
        key, kw, kb = jax.random.split(key, 3)
        bound = 1.0 / float(fan_in) ** 0.5
        w = jax.random.uniform(kw, (fan_in, fan_out), jnp.float32, -bound, bound)
        b = jax.random.uniform(kb, (fan_out,), jnp.float32, -bound, bound)
        params.append((w, b))
    return params


# Pure-JAX f32 reference (matches the PyTorch forward).
def qnet_reference(x, params):
    h = x.astype(jnp.float32)
    for idx, (w, b) in enumerate(params):
        y = jnp.dot(h, w, precision=jax.lax.Precision.HIGHEST) + b
        h = y if idx == len(params) - 1 else jnp.maximum(y, 0.0)
    return h


# ------------------------------- Main ---------------------------------------

if __name__ == "__main__":
    key = jax.random.PRNGKey(0)

    state_size = 8     # sheepdog env observation size
    action_size = 4    # discrete action count
    batch = 64         # small RL minibatch -> single grid step on 1-TC chips

    key, kx = jax.random.split(key)
    x = jax.random.normal(kx, (batch, state_size), dtype=jnp.float32)

    params = init_qnet_params(key, state_size, action_size)
    w_all, b_all = prepare_qnet_params(params, dot_dtype=jnp.float32)

    out = qnet_forward(x, w_all, b_all, action_size)
    out = jax.block_until_ready(out)

    ref = qnet_reference(x, params)
    assert out.shape == (batch, action_size)
    assert jnp.allclose(out, ref, atol=1e-2, rtol=1e-2), \
        "Pallas output mismatch vs reference"

    print("KERNEL_OK")
</pallas_src>

<mosaic_0001>
module attributes {stable_mosaic.version = 11 : i64} {
  func.func @kernel(%arg0: i32, %arg1: memref<64x8xf32, #tpu.memory_space<vmem>>, %arg2: memref<7x128x128xf32, #tpu.memory_space<vmem>>, %arg3: memref<7x1x128xf32, #tpu.memory_space<vmem>>, %arg4: memref<64x4xf32, #tpu.memory_space<vmem>>) attributes {dimension_semantics = [#tpu.dimension_semantics<parallel>], iteration_bounds = array<i64: 1>, scalar_prefetch = 0 : i64, scratch_operands = 0 : i64, tpu.core_type = #tpu.core_type<tc>, window_params = [{transform_indices = @transform_0, window_bounds = array<i64: 64, 8>}, {pipeline_mode = #tpu.pipeline_mode<synchronous>, transform_indices = @transform_1, window_bounds = array<i64: 7, 128, 128>}, {pipeline_mode = #tpu.pipeline_mode<synchronous>, transform_indices = @transform_2, window_bounds = array<i64: 7, 1, 128>}, {transform_indices = @transform_3, window_bounds = array<i64: 64, 4>}]} {
    %c0 = arith.constant 0 : index
    %c0_0 = arith.constant 0 : index
    %0 = vector.load %arg1[%c0, %c0_0] : memref<64x8xf32, #tpu.memory_space<vmem>>, vector<32x8xf32>
    %c32 = arith.constant 32 : index
    %c0_1 = arith.constant 0 : index
    %1 = vector.load %arg1[%c32, %c0_1] : memref<64x8xf32, #tpu.memory_space<vmem>>, vector<32x8xf32>
    %c0_2 = arith.constant 0 : index
    %c0_3 = arith.constant 0 : index
    %c0_4 = arith.constant 0 : index
    %2 = vector.load %arg2[%c0_2, %c0_3, %c0_4] : memref<7x128x128xf32, #tpu.memory_space<vmem>>, vector<1x8x128xf32>
    %3 = vector.shape_cast %2 : vector<1x8x128xf32> to vector<8x128xf32>
    %c0_5 = arith.constant 0 : index
    %c0_6 = arith.constant 0 : index
    %c0_7 = arith.constant 0 : index
    %4 = vector.load %arg3[%c0_5, %c0_6, %c0_7] : memref<7x1x128xf32, #tpu.memory_space<vmem>>, vector<1x1x128xf32>
    %5 = vector.shape_cast %4 : vector<1x1x128xf32> to vector<1x128xf32>
    %cst = arith.constant dense<0.000000e+00> : vector<32x128xf32>
    %6 = tpu.matmul %0, %3, %cst {dimension_numbers = #tpu.dot_dimension_numbers<[1], [0], [0], [1], [0, 0, 1, 1], [], []>} : vector<32x8xf32>, vector<8x128xf32>, vector<32x128xf32> -> vector<32x128xf32>
    %7 = vector.broadcast %5 : vector<1x128xf32> to vector<32x128xf32>
    %8 = arith.addf %6, %7 : vector<32x128xf32>
    %cst_8 = arith.constant 0.000000e+00 : f32
    %9 = vector.broadcast %cst_8 : f32 to vector<32x128xf32>
    %10 = arith.maximumf %8, %9 : vector<32x128xf32>
    %cst_9 = arith.constant dense<0.000000e+00> : vector<32x128xf32>
    %11 = tpu.matmul %1, %3, %cst_9 {dimension_numbers = #tpu.dot_dimension_numbers<[1], [0], [0], [1], [0, 0, 1, 1], [], []>} : vector<32x8xf32>, vector<8x128xf32>, vector<32x128xf32> -> vector<32x128xf32>
    %12 = vector.broadcast %5 : vector<1x128xf32> to vector<32x128xf32>
    %13 = arith.addf %11, %12 : vector<32x128xf32>
    %cst_10 = arith.constant 0.000000e+00 : f32
    %14 = vector.broadcast %cst_10 : f32 to vector<32x128xf32>
    %15 = arith.maximumf %13, %14 : vector<32x128xf32>
    %c1 = arith.constant 1 : index
    %c0_11 = arith.constant 0 : index
    %c0_12 = arith.constant 0 : index
    %16 = vector.load %arg2[%c1, %c0_11, %c0_12] : memref<7x128x128xf32, #tpu.memory_space<vmem>>, vector<1x128x128xf32>
    %17 = vector.shape_cast %16 : vector<1x128x128xf32> to vector<128x128xf32>
    %c1_13 = arith.constant 1 : index
    %c0_14 = arith.constant 0 : index
    %c0_15 = arith.constant 0 : index
    %18 = vector.load %arg3[%c1_13, %c0_14, %c0_15] : memref<7x1x128xf32, #tpu.memory_space<vmem>>, vector<1x1x128xf32>
    %19 = vector.shape_cast %18 : vector<1x1x128xf32> to vector<1x128xf32>
    %cst_16 = arith.constant dense<0.000000e+00> : vector<32x128xf32>
    %20 = tpu.matmul %10, %17, %cst_16 {dimension_numbers = #tpu.dot_dimension_numbers<[1], [0], [0], [1], [0, 0, 1, 1], [], []>} : vector<32x128xf32>, vector<128x128xf32>, vector<32x128xf32> -> vector<32x128xf32>
    %21 = vector.broadcast %19 : vector<1x128xf32> to vector<32x128xf32>
    %22 = arith.addf %20, %21 : vector<32x128xf32>
    %cst_17 = arith.constant 0.000000e+00 : f32
    %23 = vector.broadcast %cst_17 : f32 to vector<32x128xf32>
    %24 = arith.maximumf %22, %23 : vector<32x128xf32>
    %cst_18 = arith.constant dense<0.000000e+00> : vector<32x128xf32>
    %25 = tpu.matmul %15, %17, %cst_18 {dimension_numbers = #tpu.dot_dimension_numbers<[1], [0], [0], [1], [0, 0, 1, 1], [], []>} : vector<32x128xf32>, vector<128x128xf32>, vector<32x128xf32> -> vector<32x128xf32>
    %26 = vector.broadcast %19 : vector<1x128xf32> to vector<32x128xf32>
    %27 = arith.addf %25, %26 : vector<32x128xf32>
    %cst_19 = arith.constant 0.000000e+00 : f32
    %28 = vector.broadcast %cst_19 : f32 to vector<32x128xf32>
    %29 = arith.maximumf %27, %28 : vector<32x128xf32>
    %c2 = arith.constant 2 : index
    %c0_20 = arith.constant 0 : index
    %c0_21 = arith.constant 0 : index
    %30 = vector.load %arg2[%c2, %c0_20, %c0_21] : memref<7x128x128xf32, #tpu.memory_space<vmem>>, vector<1x128x128xf32>
    %31 = vector.shape_cast %30 : vector<1x128x128xf32> to vector<128x128xf32>
    %c2_22 = arith.constant 2 : index
    %c0_23 = arith.constant 0 : index
    %c0_24 = arith.constant 0 : index
    %32 = vector.load %arg3[%c2_22, %c0_23, %c0_24] : memref<7x1x128xf32, #tpu.memory_space<vmem>>, vector<1x1x128xf32>
    %33 = vector.shape_cast %32 : vector<1x1x128xf32> to vector<1x128xf32>
    %cst_25 = arith.constant dense<0.000000e+00> : vector<32x128xf32>
    %34 = tpu.matmul %24, %31, %cst_25 {dimension_numbers = #tpu.dot_dimension_numbers<[1], [0], [0], [1], [0, 0, 1, 1], [], []>} : vector<32x128xf32>, vector<128x128xf32>, vector<32x128xf32> -> vector<32x128xf32>
    %35 = vector.broadcast %33 : vector<1x128xf32> to vector<32x128xf32>
    %36 = arith.addf %34, %35 : vector<32x128xf32>
    %cst_26 = arith.constant 0.000000e+00 : f32
    %37 = vector.broadcast %cst_26 : f32 to vector<32x128xf32>
    %38 = arith.maximumf %36, %37 : vector<32x128xf32>
    %cst_27 = arith.constant dense<0.000000e+00> : vector<32x128xf32>
    %39 = tpu.matmul %29, %31, %cst_27 {dimension_numbers = #tpu.dot_dimension_numbers<[1], [0], [0], [1], [0, 0, 1, 1], [], []>} : vector<32x128xf32>, vector<128x128xf32>, vector<32x128xf32> -> vector<32x128xf32>
    %40 = vector.broadcast %33 : vector<1x128xf32> to vector<32x128xf32>
    %41 = arith.addf %39, %40 : vector<32x128xf32>
    %cst_28 = arith.constant 0.000000e+00 : f32
    %42 = vector.broadcast %cst_28 : f32 to vector<32x128xf32>
    %43 = arith.maximumf %41, %42 : vector<32x128xf32>
    %c3 = arith.constant 3 : index
    %c0_29 = arith.constant 0 : index
    %c0_30 = arith.constant 0 : index
    %44 = vector.load %arg2[%c3, %c0_29, %c0_30] : memref<7x128x128xf32, #tpu.memory_space<vmem>>, vector<1x128x128xf32>
    %45 = vector.shape_cast %44 : vector<1x128x128xf32> to vector<128x128xf32>
    %c3_31 = arith.constant 3 : index
    %c0_32 = arith.constant 0 : index
    %c0_33 = arith.constant 0 : index
    %46 = vector.load %arg3[%c3_31, %c0_32, %c0_33] : memref<7x1x128xf32, #tpu.memory_space<vmem>>, vector<1x1x128xf32>
    %47 = vector.shape_cast %46 : vector<1x1x128xf32> to vector<1x128xf32>
    %cst_34 = arith.constant dense<0.000000e+00> : vector<32x128xf32>
    %48 = tpu.matmul %38, %45, %cst_34 {dimension_numbers = #tpu.dot_dimension_numbers<[1], [0], [0], [1], [0, 0, 1, 1], [], []>} : vector<32x128xf32>, vector<128x128xf32>, vector<32x128xf32> -> vector<32x128xf32>
    %49 = vector.broadcast %47 : vector<1x128xf32> to vector<32x128xf32>
    %50 = arith.addf %48, %49 : vector<32x128xf32>
    %cst_35 = arith.constant 0.000000e+00 : f32
    %51 = vector.broadcast %cst_35 : f32 to vector<32x128xf32>
    %52 = arith.maximumf %50, %51 : vector<32x128xf32>
    %cst_36 = arith.constant dense<0.000000e+00> : vector<32x128xf32>
    %53 = tpu.matmul %43, %45, %cst_36 {dimension_numbers = #tpu.dot_dimension_numbers<[1], [0], [0], [1], [0, 0, 1, 1], [], []>} : vector<32x128xf32>, vector<128x128xf32>, vector<32x128xf32> -> vector<32x128xf32>
    %54 = vector.broadcast %47 : vector<1x128xf32> to vector<32x128xf32>
    %55 = arith.addf %53, %54 : vector<32x128xf32>
    %cst_37 = arith.constant 0.000000e+00 : f32
    %56 = vector.broadcast %cst_37 : f32 to vector<32x128xf32>
    %57 = arith.maximumf %55, %56 : vector<32x128xf32>
    %c4 = arith.constant 4 : index
    %c0_38 = arith.constant 0 : index
    %c0_39 = arith.constant 0 : index
    %58 = vector.load %arg2[%c4, %c0_38, %c0_39] : memref<7x128x128xf32, #tpu.memory_space<vmem>>, vector<1x128x128xf32>
    %59 = vector.shape_cast %58 : vector<1x128x128xf32> to vector<128x128xf32>
    %c4_40 = arith.constant 4 : index
    %c0_41 = arith.constant 0 : index
    %c0_42 = arith.constant 0 : index
    %60 = vector.load %arg3[%c4_40, %c0_41, %c0_42] : memref<7x1x128xf32, #tpu.memory_space<vmem>>, vector<1x1x128xf32>
    %61 = vector.shape_cast %60 : vector<1x1x128xf32> to vector<1x128xf32>
    %cst_43 = arith.constant dense<0.000000e+00> : vector<32x128xf32>
    %62 = tpu.matmul %52, %59, %cst_43 {dimension_numbers = #tpu.dot_dimension_numbers<[1], [0], [0], [1], [0, 0, 1, 1], [], []>} : vector<32x128xf32>, vector<128x128xf32>, vector<32x128xf32> -> vector<32x128xf32>
    %63 = vector.broadcast %61 : vector<1x128xf32> to vector<32x128xf32>
    %64 = arith.addf %62, %63 : vector<32x128xf32>
    %cst_44 = arith.constant 0.000000e+00 : f32
    %65 = vector.broadcast %cst_44 : f32 to vector<32x128xf32>
    %66 = arith.maximumf %64, %65 : vector<32x128xf32>
    %cst_45 = arith.constant dense<0.000000e+00> : vector<32x128xf32>
    %67 = tpu.matmul %57, %59, %cst_45 {dimension_numbers = #tpu.dot_dimension_numbers<[1], [0], [0], [1], [0, 0, 1, 1], [], []>} : vector<32x128xf32>, vector<128x128xf32>, vector<32x128xf32> -> vector<32x128xf32>
    %68 = vector.broadcast %61 : vector<1x128xf32> to vector<32x128xf32>
    %69 = arith.addf %67, %68 : vector<32x128xf32>
    %cst_46 = arith.constant 0.000000e+00 : f32
    %70 = vector.broadcast %cst_46 : f32 to vector<32x128xf32>
    %71 = arith.maximumf %69, %70 : vector<32x128xf32>
    %c5 = arith.constant 5 : index
    %c0_47 = arith.constant 0 : index
    %c0_48 = arith.constant 0 : index
    %72 = vector.load %arg2[%c5, %c0_47, %c0_48] : memref<7x128x128xf32, #tpu.memory_space<vmem>>, vector<1x128x128xf32>
    %73 = vector.shape_cast %72 : vector<1x128x128xf32> to vector<128x128xf32>
    %c5_49 = arith.constant 5 : index
    %c0_50 = arith.constant 0 : index
    %c0_51 = arith.constant 0 : index
    %74 = vector.load %arg3[%c5_49, %c0_50, %c0_51] : memref<7x1x128xf32, #tpu.memory_space<vmem>>, vector<1x1x128xf32>
    %75 = vector.shape_cast %74 : vector<1x1x128xf32> to vector<1x128xf32>
    %cst_52 = arith.constant dense<0.000000e+00> : vector<32x128xf32>
    %76 = tpu.matmul %66, %73, %cst_52 {dimension_numbers = #tpu.dot_dimension_numbers<[1], [0], [0], [1], [0, 0, 1, 1], [], []>} : vector<32x128xf32>, vector<128x128xf32>, vector<32x128xf32> -> vector<32x128xf32>
    %77 = vector.broadcast %75 : vector<1x128xf32> to vector<32x128xf32>
    %78 = arith.addf %76, %77 : vector<32x128xf32>
    %cst_53 = arith.constant 0.000000e+00 : f32
    %79 = vector.broadcast %cst_53 : f32 to vector<32x128xf32>
    %80 = arith.maximumf %78, %79 : vector<32x128xf32>
    %cst_54 = arith.constant dense<0.000000e+00> : vector<32x128xf32>
    %81 = tpu.matmul %71, %73, %cst_54 {dimension_numbers = #tpu.dot_dimension_numbers<[1], [0], [0], [1], [0, 0, 1, 1], [], []>} : vector<32x128xf32>, vector<128x128xf32>, vector<32x128xf32> -> vector<32x128xf32>
    %82 = vector.broadcast %75 : vector<1x128xf32> to vector<32x128xf32>
    %83 = arith.addf %81, %82 : vector<32x128xf32>
    %cst_55 = arith.constant 0.000000e+00 : f32
    %84 = vector.broadcast %cst_55 : f32 to vector<32x128xf32>
    %85 = arith.maximumf %83, %84 : vector<32x128xf32>
    %c6 = arith.constant 6 : index
    %c0_56 = arith.constant 0 : index
    %c0_57 = arith.constant 0 : index
    %86 = vector.load %arg2[%c6, %c0_56, %c0_57] : memref<7x128x128xf32, #tpu.memory_space<vmem>>, vector<1x128x128xf32>
    %87 = vector.shape_cast %86 : vector<1x128x128xf32> to vector<128x128xf32>
    %c6_58 = arith.constant 6 : index
    %c0_59 = arith.constant 0 : index
    %c0_60 = arith.constant 0 : index
    %88 = vector.load %arg3[%c6_58, %c0_59, %c0_60] : memref<7x1x128xf32, #tpu.memory_space<vmem>>, vector<1x1x128xf32>
    %89 = vector.shape_cast %88 : vector<1x1x128xf32> to vector<1x128xf32>
    %cst_61 = arith.constant dense<0.000000e+00> : vector<32x128xf32>
    %90 = tpu.matmul %80, %87, %cst_61 {dimension_numbers = #tpu.dot_dimension_numbers<[1], [0], [0], [1], [0, 0, 1, 1], [], []>} : vector<32x128xf32>, vector<128x128xf32>, vector<32x128xf32> -> vector<32x128xf32>
    %91 = vector.broadcast %89 : vector<1x128xf32> to vector<32x128xf32>
    %92 = arith.addf %90, %91 : vector<32x128xf32>
    %cst_62 = arith.constant dense<0.000000e+00> : vector<32x128xf32>
    %93 = tpu.matmul %85, %87, %cst_62 {dimension_numbers = #tpu.dot_dimension_numbers<[1], [0], [0], [1], [0, 0, 1, 1], [], []>} : vector<32x128xf32>, vector<128x128xf32>, vector<32x128xf32> -> vector<32x128xf32>
    %94 = vector.broadcast %89 : vector<1x128xf32> to vector<32x128xf32>
    %95 = arith.addf %93, %94 : vector<32x128xf32>
    %96 = vector.extract_strided_slice %92 {offsets = [0, 0], sizes = [32, 4], strides = [1, 1]} : vector<32x128xf32> to vector<32x4xf32>
    %c0_63 = arith.constant 0 : index
    %c0_64 = arith.constant 0 : index
    %97 = vector.load %arg4[%c0_63, %c0_64] : memref<64x4xf32, #tpu.memory_space<vmem>>, vector<32x4xf32>
    tpu.vector_store %arg4[%c0_63, %c0_64], %96 {strides = array<i32>} : memref<64x4xf32, #tpu.memory_space<vmem>>, vector<32x4xf32>,
    %98 = vector.extract_strided_slice %95 {offsets = [0, 0], sizes = [32, 4], strides = [1, 1]} : vector<32x128xf32> to vector<32x4xf32>
    %c32_65 = arith.constant 32 : index
    %c0_66 = arith.constant 0 : index
    %99 = vector.load %arg4[%c32_65, %c0_66] : memref<64x4xf32, #tpu.memory_space<vmem>>, vector<32x4xf32>
    tpu.vector_store %arg4[%c32_65, %c0_66], %98 {strides = array<i32>} : memref<64x4xf32, #tpu.memory_space<vmem>>, vector<32x4xf32>,
    return
  }
  func.func @transform_0(%arg0: i32) -> (i32, i32) {
    %c0_i32 = arith.constant 0 : i32
    %c0_i32_0 = arith.constant 0 : i32
    return %arg0, %c0_i32 : i32, i32
  }
  func.func @transform_1(%arg0: i32) -> (i32, i32, i32) {
    %c0_i32 = arith.constant 0 : i32
    %c0_i32_0 = arith.constant 0 : i32
    %c0_i32_1 = arith.constant 0 : i32
    %c0_i32_2 = arith.constant 0 : i32
    return %c0_i32, %c0_i32_0, %c0_i32_1 : i32, i32, i32
  }
  func.func @transform_2(%arg0: i32) -> (i32, i32, i32) {
    %c0_i32 = arith.constant 0 : i32
    %c0_i32_0 = arith.constant 0 : i32
    %c0_i32_1 = arith.constant 0 : i32
    %c0_i32_2 = arith.constant 0 : i32
    return %c0_i32, %c0_i32_0, %c0_i32_1 : i32, i32, i32
  }
  func.func @transform_3(%arg0: i32) -> (i32, i32) {
    %c0_i32 = arith.constant 0 : i32
    %c0_i32_0 = arith.constant 0 : i32
    return %arg0, %c0_i32 : i32, i32
  }
}

</mosaic_0001>

<bundles_post_ra>
// kernel: tpu_custom_call.1
= control target key start
LH: loop header
LB: loop body
LE: loop exit
PB: predicated region body
PF: predicated region fallthrough
CT: control target
= control target key end

     0   :  { %8 = vsyncpa [#allocation3], 0  ;;  %s718_s15 = smov [#allocation2]   ;;  %s719_s17 = smov 128   ;;  %s879_s0 = inlined_call_operand.vmem [shape: f32[64,8], index: 0, kind: input, shape index: {}]   ;;  %s880_s1 = inlined_call_operand.hbm [shape: f32[7,128,128], index: 1, kind: input, shape index: {}]   ;;  %s881_s2 = inlined_call_operand.vmem [shape: f32[7,1,128], index: 2, kind: input, shape index: {}]   ;;  %s882_s3 = inlined_call_operand.vmem [shape: f32[64,4], index: 3, kind: output, shape index: {}]  }
   0x1   :  { %s15_s14 = sshll.u32 %s880_s1, 4  ;;  %s17_s16 = sshll.u32 %s718_s15, 4  ;;  %s16_s14 = int_to_ptr.hbm [resolvable:$true] %s15_s14  ;;  %s18_s16 = int_to_ptr.vmem [resolvable:$true] %s17_s16 }
   0x2   :  { %s720_s18 = smov 8  }
   0x3   :  { %23 = dma.hbm_to_vmem [thread:$0]  %s16_s14, 14336, %s18_s16, [#allocation3], %s719_s17, %s719_s17, %s720_s18  }
   0x4   :  { %716 = dma.done.wait [#allocation3], 14336  }
   0x5   :  { %717 = vsyncadd [#allocation3], 4294952960  ;;  %vm43_vm0 = vcmask 64512   ;;  %v38_v0 = vld [vmem:[#allocation2] sm:$0xff]  ;;  %v150_v3 = vld [vmem:[#allocation2 + $0xf8] sm:$0xff]  ;;  %vm654_vm1 = vcmask 31744  }
   0x6   :  { %v30_v1 = vld [vmem:[%s879_s0] sm:$0xff]  ;;  %71 = vmatpush.msra.mxu0 %v38_v0  ;;  %116 = vmatpush.msra.mxu1 %v38_v0  ;;  %v149_v4 = vld [vmem:[#allocation2 + $0xf0] sm:$0xff]  ;;  %v148_v5 = vld [vmem:[#allocation2 + $0xe8] sm:$0xff] }
   0x7   :  { %v34_v2 = vld [vmem:[%s879_s0 + $0x20] sm:$0xff]  ;;  %668 = vmatmul.msk.f32.vlgmr.msra.gmra.mxu0 %vm43_vm0, %v30_v1  ;;  %156 = vmatpush.msra.mxu2 %v150_v3  ;;  %v31_v6 = vld [vmem:[%s879_s0 + $0x8] sm:$0xff]  ;;  %v146_v9 = vld [vmem:[#allocation2 + $0xd8] sm:$0xff] }
   0x8   :  { %672 = vmatmul.msk.f32.vlgmr.msra.gmra.mxu1 %vm43_vm0, %v34_v2  ;;  %189 = vmatpush.msra.mxu3 %v150_v3  ;;  %v35_v7 = vld [vmem:[%s879_s0 + $0x28] sm:$0xff]  ;;  %v147_v8 = vld [vmem:[#allocation2 + $0xe0] sm:$0xff]  ;;  %v145_v10 = vld [vmem:[#allocation2 + $0xd0] sm:$0xff] }
   0x9   :  { %157 = vmatpush.msra.mxu2 %v149_v4  ;;  %v144_v11 = vld [vmem:[#allocation2 + $0xc8] sm:$0xff]  ;;  %v32_v12 = vld [vmem:[%s879_s0 + $0x10] sm:$0xff]  ;;  %v143_v14 = vld [vmem:[#allocation2 + $0xc0] sm:$0xff] }
   0xa   :  { %190 = vmatpush.msra.mxu3 %v149_v4  ;;  %v36_v13 = vld [vmem:[%s879_s0 + $0x30] sm:$0xff]  ;;  %v142_v15 = vld [vmem:[#allocation2 + $0xb8] sm:$0xff]  ;;  %v140_v17 = vld [vmem:[#allocation2 + $0xa8] sm:$0xff] }
   0xb   :  { %158 = vmatpush.msra.mxu2 %v148_v5  ;;  %v141_v16 = vld [vmem:[#allocation2 + $0xb0] sm:$0xff]  ;;  %v33_v18 = vld [vmem:[%s879_s0 + $0x18] sm:$0xff]  ;;  %v139_v20 = vld [vmem:[#allocation2 + $0xa0] sm:$0xff] }
   0xc   :  { %191 = vmatpush.msra.mxu3 %v148_v5  ;;  %v37_v19 = vld [vmem:[%s879_s0 + $0x38] sm:$0xff]  ;;  %v137_v22 = vld [vmem:[#allocation2 + $0x90] sm:$0xff]  ;;  %v136_v23 = vld [vmem:[#allocation2 + $0x88] sm:$0xff] }
   0xd   :  { %159 = vmatpush.msra.mxu2 %v147_v8  ;;  %v138_v21 = vld [vmem:[#allocation2 + $0x98] sm:$0xff]  ;;  %v135_v24 = vld [vmem:[#allocation2 + $0x80] sm:$0xff]  ;;  %v237_v27 = vld [vmem:[#allocation2 + $0x170] sm:$0xff] }
   0xe   :  { %192 = vmatpush.msra.mxu3 %v147_v8  ;;  %v779_v25 = vld [vmem:[%s881_s2] ss:$0 sm:$0xff]  ;;  %v238_v26 = vld [vmem:[#allocation2 + $0x178] sm:$0xff]  ;;  %v236_v28 = vld [vmem:[#allocation2 + $0x168] sm:$0xff] }
   0xf   :  { %669 = vmatmul.msk.f32.gmra.mxu0 %vm43_vm0, %v31_v6  ;;  %160 = vmatpush.msra.mxu2 %v146_v9  ;;  %v235_v33 = vld [vmem:[#allocation2 + $0x160] sm:$0xff]  ;;  %v234_v36 = vld [vmem:[#allocation2 + $0x158] sm:$0xff]  ;;  %v233_v37 = vld [vmem:[#allocation2 + $0x150] sm:$0xff] }
  0x10   :  { %673 = vmatmul.msk.f32.gmra.mxu1 %vm43_vm0, %v35_v7  ;;  %193 = vmatpush.msra.mxu3 %v146_v9  ;;  %v232_v38 = vld [vmem:[#allocation2 + $0x148] sm:$0xff]  ;;  %v231_v43 = vld [vmem:[#allocation2 + $0x140] sm:$0xff]  ;;  %v230_v46 = vld [vmem:[#allocation2 + $0x138] sm:$0xff] }
  0x11   :  { %161 = vmatpush.msra.mxu2 %v145_v10  ;;  %244 = vmatpush.msrb.mxu0 %v238_v26  ;;  %v229_v47 = vld [vmem:[#allocation2 + $0x130] sm:$0xff]  ;;  %v228_v48 = vld [vmem:[#allocation2 + $0x128] sm:$0xff]  ;;  %v227_v53 = vld [vmem:[#allocation2 + $0x120] sm:$0xff] }
  0x12   :  { %194 = vmatpush.msra.mxu3 %v145_v10  ;;  %277 = vmatpush.msrb.mxu1 %v238_v26  ;;  %v226_v56 = vld [vmem:[#allocation2 + $0x118] sm:$0xff]  ;;  %v225_v57 = vld [vmem:[#allocation2 + $0x110] sm:$0xff]  ;;  %v224_v0 = vld [vmem:[#allocation2 + $0x108] sm:$0xff] }
  0x13   :  { %162 = vmatpush.msra.mxu2 %v144_v11  ;;  %245 = vmatpush.msrb.mxu0 %v237_v27  ;;  %v223_v1 = vld [vmem:[#allocation2 + $0x100] sm:$0xff]  ;;  %v326_v3 = vld [vmem:[#allocation2 + $0x1f8] sm:$0xff]  ;;  %v325_v4 = vld [vmem:[#allocation2 + $0x1f0] sm:$0xff] }
  0x14   :  { %195 = vmatpush.msra.mxu3 %v144_v11  ;;  %278 = vmatpush.msrb.mxu1 %v237_v27  ;;  %v792_v2 = vld [vmem:[%s881_s2 + $0x1] ss:$0 sm:$0xff]  ;;  %v324_v5 = vld [vmem:[#allocation2 + $0x1e8] sm:$0xff] }
  0x15   :  { %163 = vmatpush.msra.mxu2 %v143_v14  ;;  %246 = vmatpush.msrb.mxu0 %v236_v28  ;;  %v323_v10 = vld [vmem:[#allocation2 + $0x1e0] sm:$0xff] }
  0x16   :  { %196 = vmatpush.msra.mxu3 %v143_v14  ;;  %279 = vmatpush.msrb.mxu1 %v236_v28  ;;  %v321_v14 = vld [vmem:[#allocation2 + $0x1d0] sm:$0xff] }
  0x17   :  { %670 = vmatmul.msk.f32.gmra.mxu0 %vm43_vm0, %v32_v12  ;;  %164 = vmatpush.msra.mxu2 %v142_v15 }
  0x18   :  { %674 = vmatmul.msk.f32.gmra.mxu1 %vm43_vm0, %v36_v13  ;;  %197 = vmatpush.msra.mxu3 %v142_v15  ;;  %v322_v13 = vld [vmem:[#allocation2 + $0x1d8] sm:$0xff]  ;;  %v320_v15 = vld [vmem:[#allocation2 + $0x1c8] sm:$0xff] }
  0x19   :  { %165 = vmatpush.msra.mxu2 %v141_v16  ;;  %247 = vmatpush.msrb.mxu0 %v235_v33 }
  0x1a   :  { %198 = vmatpush.msra.mxu3 %v141_v16  ;;  %280 = vmatpush.msrb.mxu1 %v235_v33  ;;  %v314_v33 = vld [vmem:[#allocation2 + $0x198] sm:$0xff] }
  0x1b   :  { %166 = vmatpush.msra.mxu2 %v140_v17  ;;  %248 = vmatpush.msrb.mxu0 %v234_v36 }
  0x1c   :  { %199 = vmatpush.msra.mxu3 %v140_v17  ;;  %281 = vmatpush.msrb.mxu1 %v234_v36 }
  0x1d   :  { %167 = vmatpush.msra.mxu2 %v139_v20  ;;  %249 = vmatpush.msrb.mxu0 %v233_v37 }
  0x1e   :  { %200 = vmatpush.msra.mxu3 %v139_v20  ;;  %282 = vmatpush.msrb.mxu1 %v233_v37  ;;  %v319_v20 = vld [vmem:[#allocation2 + $0x1c0] sm:$0xff] }
  0x1f   :  { %671 = vmatmul.msk.f32.gmra.mxu0 %vm43_vm0, %v33_v18  ;;  %168 = vmatpush.msra.mxu2 %v138_v21 }
  0x20   :  { %675 = vmatmul.msk.f32.gmra.mxu1 %vm43_vm0, %v37_v19  ;;  %201 = vmatpush.msra.mxu3 %v138_v21 }
  0x21   :  { %169 = vmatpush.msra.mxu2 %v137_v22  ;;  %250 = vmatpush.msrb.mxu0 %v232_v38 }
  0x22   :  { %202 = vmatpush.msra.mxu3 %v137_v22  ;;  %283 = vmatpush.msrb.mxu1 %v232_v38 }
  0x23   :  { %170 = vmatpush.msra.mxu2 %v136_v23  ;;  %251 = vmatpush.msrb.mxu0 %v231_v43 }
  0x24   :  { %203 = vmatpush.msra.mxu3 %v136_v23  ;;  %284 = vmatpush.msrb.mxu1 %v231_v43  ;;  %v318_v23 = vld [vmem:[#allocation2 + $0x1b8] sm:$0xff]  ;;  %v805_v43 = vld [vmem:[%s881_s2 + $0x2] ss:$0 sm:$0xff] }
  0x25   :  { %171 = vmatpush.msra.mxu2 %v135_v24  ;;  %252 = vmatpush.msrb.mxu0 %v230_v46 }
  0x26   :  { %204 = vmatpush.msra.mxu3 %v135_v24  ;;  %285 = vmatpush.msrb.mxu1 %v230_v46  ;;  %v317_v24 = vld [vmem:[#allocation2 + $0x1b0] sm:$0xff]  ;;  %v412_v46 = vld [vmem:[#allocation2 + $0x268] sm:$0xff] }
  0x27   :  { %253 = vmatpush.msrb.mxu0 %v229_v47  ;;  %332 = vmatpush.msrb.mxu2 %v326_v3 }
  0x28   :  { %286 = vmatpush.msrb.mxu1 %v229_v47  ;;  %365 = vmatpush.msrb.mxu3 %v326_v3 }
  0x29   :  { %254 = vmatpush.msrb.mxu0 %v228_v48  ;;  %333 = vmatpush.msrb.mxu2 %v325_v4 }
  0x2a   :  { %287 = vmatpush.msrb.mxu1 %v228_v48  ;;  %366 = vmatpush.msrb.mxu3 %v325_v4 }
  0x2b   :  { %255 = vmatpush.msrb.mxu0 %v227_v53  ;;  %334 = vmatpush.msrb.mxu2 %v324_v5 }
  0x2c   :  { %288 = vmatpush.msrb.mxu1 %v227_v53  ;;  %367 = vmatpush.msrb.mxu3 %v324_v5 }
  0x2d   :  { %256 = vmatpush.msrb.mxu0 %v226_v56  ;;  %335 = vmatpush.msrb.mxu2 %v323_v10 }
  0x2e   :  { %289 = vmatpush.msrb.mxu1 %v226_v56  ;;  %368 = vmatpush.msrb.mxu3 %v323_v10  ;;  %v408_v56 = vld [vmem:[#allocation2 + $0x248] sm:$0xff]  ;;  %v402_v10 = vld [vmem:[#allocation2 + $0x218] sm:$0xff] }
  0x2f   :  { %257 = vmatpush.msrb.mxu0 %v225_v57  ;;  %336 = vmatpush.msrb.mxu2 %v322_v13 }
  0x30   :  { %290 = vmatpush.msrb.mxu1 %v225_v57  ;;  %369 = vmatpush.msrb.mxu3 %v322_v13 }
  0x31   :  { %258 = vmatpush.msrb.mxu0 %v224_v0  ;;  %337 = vmatpush.msrb.mxu2 %v321_v14 }
  0x32   :  { %291 = vmatpush.msrb.mxu1 %v224_v0  ;;  %370 = vmatpush.msrb.mxu3 %v321_v14  ;;  %v406_v0 = vld [vmem:[#allocation2 + $0x238] sm:$0xff] }
  0x33   :  { %259 = vmatpush.msrb.mxu0 %v223_v1  ;;  %338 = vmatpush.msrb.mxu2 %v320_v15 }
  0x34   :  { %292 = vmatpush.msrb.mxu1 %v223_v1  ;;  %371 = vmatpush.msrb.mxu3 %v320_v15  ;;  %v405_v1 = vld [vmem:[#allocation2 + $0x230] sm:$0xff] }
  0x35   :  { %339 = vmatpush.msrb.mxu2 %v319_v20 }
  0x36   :  { %372 = vmatpush.msrb.mxu3 %v319_v20  ;;  %v818_v20 = vld [vmem:[%s881_s2 + $0x3] ss:$0 sm:$0xff] }
  0x37   :  { %340 = vmatpush.msrb.mxu2 %v318_v23 }
  0x38   :  { %373 = vmatpush.msrb.mxu3 %v318_v23  ;;  %v500_v23 = vld [vmem:[#allocation2 + $0x2e8] sm:$0xff] }
  0x39   :  { %341 = vmatpush.msrb.mxu2 %v317_v24 }
  0x3a   :  { %374 = vmatpush.msrb.mxu3 %v317_v24 }
  0x84   :  { %v73_v29 = vpop.f32.mrf.mxu0 }
  0x85   :  { %v118_v30 = vpop.f32.mrf.mxu1  ;;  %v74_v31 = vadd.f32 %v779_v25, %v73_v29 }
  0x86   :  { %v119_v32 = vadd.f32 %v779_v25, %v118_v30  ;;  %v315_v30 = vld [vmem:[#allocation2 + $0x1a0] sm:$0xff] }
  0x87   :  { %v85_v34 = vmax.f32 %v74_v31, 0.0 }
  0x88   :  { %v130_v35 = vmax.f32 %v119_v32, 0.0 }
  0x89   :  { %172 = vmatmul.f32.vlgmr.msra.gmra.mxu2 %v85_v34  ;;  %v313_v34 = vld [vmem:[#allocation2 + $0x190] sm:$0xff] }
  0x8a   :  { %205 = vmatmul.f32.vlgmr.msra.gmra.mxu3 %v130_v35 }
  0x8c   :  { %v76_v39 = vpop.f32.mrf.mxu0 }
  0x8d   :  { %v121_v40 = vpop.f32.mrf.mxu1  ;;  %v77_v41 = vadd.f32 %v779_v25, %v76_v39 }
  0x8e   :  { %v122_v42 = vadd.f32 %v779_v25, %v121_v40 }
  0x8f   :  { %v86_v44 = vmax.f32 %v77_v41, 0.0  ;;  %v312_v41 = vld [vmem:[#allocation2 + $0x188] sm:$0xff] }
  0x90   :  { %v131_v45 = vmax.f32 %v122_v42, 0.0  ;;  %v311_v42 = vld [vmem:[#allocation2 + $0x180] sm:$0xff] }
  0x91   :  { %175 = vmatmul.f32.gmra.mxu2 %v86_v44  ;;  %v414_v44 = vld [vmem:[#allocation2 + $0x278] sm:$0xff] }
  0x92   :  { %208 = vmatmul.f32.gmra.mxu3 %v131_v45  ;;  %v413_v45 = vld [vmem:[#allocation2 + $0x270] sm:$0xff]  ;;  %420 = vmatpush.msra.mxu0 %v414_v44 }
  0x93   :  { %453 = vmatpush.msra.mxu1 %v414_v44 }
  0x94   :  { %v79_v49 = vpop.f32.mrf.mxu0  ;;  %421 = vmatpush.msra.mxu0 %v413_v45 }
  0x95   :  { %v124_v50 = vpop.f32.mrf.mxu1  ;;  %v80_v51 = vadd.f32 %v779_v25, %v79_v49  ;;  %454 = vmatpush.msra.mxu1 %v413_v45 }
  0x96   :  { %v125_v52 = vadd.f32 %v779_v25, %v124_v50  ;;  %422 = vmatpush.msra.mxu0 %v412_v46 }
  0x97   :  { %v87_v54 = vmax.f32 %v80_v51, 0.0  ;;  %v411_v51 = vld [vmem:[#allocation2 + $0x260] sm:$0xff]  ;;  %455 = vmatpush.msra.mxu1 %v412_v46 }
  0x98   :  { %v132_v55 = vmax.f32 %v125_v52, 0.0  ;;  %423 = vmatpush.msra.mxu0 %v411_v51 }
  0x99   :  { %178 = vmatmul.f32.gmra.mxu2 %v87_v54  ;;  %v410_v54 = vld [vmem:[#allocation2 + $0x258] sm:$0xff]  ;;  %456 = vmatpush.msra.mxu1 %v411_v51 }
  0x9a   :  { %211 = vmatmul.f32.gmra.mxu3 %v132_v55  ;;  %v409_v55 = vld [vmem:[#allocation2 + $0x250] sm:$0xff]  ;;  %424 = vmatpush.msra.mxu0 %v410_v54  ;;  %v490_v51 = vld [vmem:[#allocation2 + $0x298] sm:$0xff] }
  0x9b   :  { %457 = vmatpush.msra.mxu1 %v410_v54 }
  0x9c   :  { %v82_v58 = vpop.f32.mrf.mxu0  ;;  %425 = vmatpush.msra.mxu0 %v409_v55 }
  0x9d   :  { %v127_v59 = vpop.f32.mrf.mxu1  ;;  %v83_v60 = vadd.f32 %v779_v25, %v82_v58  ;;  %458 = vmatpush.msra.mxu1 %v409_v55 }
  0x9e   :  { %v128_v61 = vadd.f32 %v779_v25, %v127_v59  ;;  %v316_v25 = vld [vmem:[#allocation2 + $0x1a8] sm:$0xff]  ;;  %426 = vmatpush.msra.mxu0 %v408_v56 }
  0x9f   :  { %v88_v62 = vmax.f32 %v83_v60, 0.0  ;;  %342 = vmatpush.msrb.mxu2 %v316_v25  ;;  %375 = vmatpush.msrb.mxu3 %v316_v25 }
  0xa0   :  { %v133_v63 = vmax.f32 %v128_v61, 0.0  ;;  %v407_v61 = vld [vmem:[#allocation2 + $0x240] sm:$0xff]  ;;  %459 = vmatpush.msra.mxu1 %v408_v56 }
  0xa1   :  { %181 = vmatmul.f32.gmra.mxu2 %v88_v62  ;;  %376 = vmatpush.msrb.mxu3 %v315_v30 }
  0xa2   :  { %214 = vmatmul.f32.gmra.mxu3 %v133_v63  ;;  %343 = vmatpush.msrb.mxu2 %v315_v30 }
  0xa3   :  { %377 = vmatpush.msrb.mxu3 %v314_v33  ;;  %427 = vmatpush.msra.mxu0 %v407_v61 }
  0xa4   :  { %344 = vmatpush.msrb.mxu2 %v314_v33  ;;  %460 = vmatpush.msra.mxu1 %v407_v61  ;;  %v496_v33 = vld [vmem:[#allocation2 + $0x2c8] sm:$0xff]  ;;  %v831_v61 = vld [vmem:[%s881_s2 + $0x4] ss:$0 sm:$0xff] }
  0xa5   :  { %378 = vmatpush.msrb.mxu3 %v313_v34  ;;  %428 = vmatpush.msra.mxu0 %v406_v0 }
  0xa6   :  { %345 = vmatpush.msrb.mxu2 %v313_v34  ;;  %461 = vmatpush.msra.mxu1 %v406_v0  ;;  %v588_v0 = vld [vmem:[#allocation2 + $0x368] sm:$0xff] }
  0xa7   :  { %379 = vmatpush.msrb.mxu3 %v312_v41  ;;  %429 = vmatpush.msra.mxu0 %v405_v1 }
  0xa8   :  { %346 = vmatpush.msrb.mxu2 %v312_v41  ;;  %462 = vmatpush.msra.mxu1 %v405_v1  ;;  %v494_v41 = vld [vmem:[#allocation2 + $0x2b8] sm:$0xff] }
  0xa9   :  { %380 = vmatpush.msrb.mxu3 %v311_v42 }
  0xaa   :  { %347 = vmatpush.msrb.mxu2 %v311_v42  ;;  %v493_v42 = vld [vmem:[#allocation2 + $0x2b0] sm:$0xff] }
 0x10c   :  { %v173_v6 = vpop.f32.mrf.mxu2 }
 0x10d   :  { %v206_v7 = vpop.f32.mrf.mxu3  ;;  %v174_v8 = vadd.f32 %v792_v2, %v173_v6 }
 0x10e   :  { %v207_v9 = vadd.f32 %v792_v2, %v206_v7  ;;  %v403_v7 = vld [vmem:[#allocation2 + $0x220] sm:$0xff] }
 0x10f   :  { %v185_v11 = vmax.f32 %v174_v8, 0.0 }
 0x110   :  { %v218_v12 = vmax.f32 %v207_v9, 0.0 }
 0x111   :  { %260 = vmatmul.f32.vlgmr.msrb.gmra.mxu0 %v185_v11  ;;  %v401_v11 = vld [vmem:[#allocation2 + $0x210] sm:$0xff] }
 0x112   :  { %293 = vmatmul.f32.vlgmr.msrb.gmra.mxu1 %v218_v12 }
 0x114   :  { %v176_v16 = vpop.f32.mrf.mxu2 }
 0x115   :  { %v209_v17 = vpop.f32.mrf.mxu3  ;;  %v177_v18 = vadd.f32 %v792_v2, %v176_v16 }
 0x116   :  { %v210_v19 = vadd.f32 %v792_v2, %v209_v17 }
 0x117   :  { %v186_v21 = vmax.f32 %v177_v18, 0.0  ;;  %v400_v18 = vld [vmem:[#allocation2 + $0x208] sm:$0xff] }
 0x118   :  { %v219_v22 = vmax.f32 %v210_v19, 0.0  ;;  %v399_v19 = vld [vmem:[#allocation2 + $0x200] sm:$0xff] }
 0x119   :  { %263 = vmatmul.f32.gmra.mxu0 %v186_v21  ;;  %v502_v21 = vld [vmem:[#allocation2 + $0x2f8] sm:$0xff] }
 0x11a   :  { %296 = vmatmul.f32.gmra.mxu1 %v219_v22  ;;  %v501_v22 = vld [vmem:[#allocation2 + $0x2f0] sm:$0xff]  ;;  %508 = vmatpush.msra.mxu2 %v502_v21 }
 0x11b   :  { %541 = vmatpush.msra.mxu3 %v502_v21 }
 0x11c   :  { %v179_v26 = vpop.f32.mrf.mxu2  ;;  %509 = vmatpush.msra.mxu2 %v501_v22 }
 0x11d   :  { %v212_v27 = vpop.f32.mrf.mxu3  ;;  %v180_v28 = vadd.f32 %v792_v2, %v179_v26  ;;  %542 = vmatpush.msra.mxu3 %v501_v22 }
 0x11e   :  { %v213_v29 = vadd.f32 %v792_v2, %v212_v27  ;;  %510 = vmatpush.msra.mxu2 %v500_v23 }
 0x11f   :  { %v187_v31 = vmax.f32 %v180_v28, 0.0  ;;  %v499_v28 = vld [vmem:[#allocation2 + $0x2e0] sm:$0xff]  ;;  %543 = vmatpush.msra.mxu3 %v500_v23 }
 0x120   :  { %v220_v32 = vmax.f32 %v213_v29, 0.0  ;;  %511 = vmatpush.msra.mxu2 %v499_v28 }
 0x121   :  { %266 = vmatmul.f32.gmra.mxu0 %v187_v31  ;;  %v498_v31 = vld [vmem:[#allocation2 + $0x2d8] sm:$0xff]  ;;  %544 = vmatpush.msra.mxu3 %v499_v28 }
 0x122   :  { %299 = vmatmul.f32.gmra.mxu1 %v220_v32  ;;  %v497_v32 = vld [vmem:[#allocation2 + $0x2d0] sm:$0xff]  ;;  %512 = vmatpush.msra.mxu2 %v498_v31  ;;  %v578_v28 = vld [vmem:[#allocation2 + $0x318] sm:$0xff] }
 0x123   :  { %545 = vmatpush.msra.mxu3 %v498_v31 }
 0x124   :  { %v182_v35 = vpop.f32.mrf.mxu2  ;;  %513 = vmatpush.msra.mxu2 %v497_v32 }
 0x125   :  { %v215_v36 = vpop.f32.mrf.mxu3  ;;  %v183_v37 = vadd.f32 %v792_v2, %v182_v35  ;;  %546 = vmatpush.msra.mxu3 %v497_v32 }
 0x126   :  { %v216_v38 = vadd.f32 %v792_v2, %v215_v36  ;;  %v404_v2 = vld [vmem:[#allocation2 + $0x228] sm:$0xff]  ;;  %514 = vmatpush.msra.mxu2 %v496_v33 }
 0x127   :  { %v188_v39 = vmax.f32 %v183_v37, 0.0  ;;  %430 = vmatpush.msra.mxu0 %v404_v2  ;;  %463 = vmatpush.msra.mxu1 %v404_v2 }
 0x128   :  { %v221_v40 = vmax.f32 %v216_v38, 0.0  ;;  %v495_v38 = vld [vmem:[#allocation2 + $0x2c0] sm:$0xff]  ;;  %547 = vmatpush.msra.mxu3 %v496_v33 }
 0x129   :  { %269 = vmatmul.f32.gmra.mxu0 %v188_v39  ;;  %464 = vmatpush.msra.mxu1 %v403_v7 }
 0x12a   :  { %302 = vmatmul.f32.gmra.mxu1 %v221_v40  ;;  %431 = vmatpush.msra.mxu0 %v403_v7 }
 0x12b   :  { %465 = vmatpush.msra.mxu1 %v402_v10  ;;  %515 = vmatpush.msra.mxu2 %v495_v38 }
 0x12c   :  { %432 = vmatpush.msra.mxu0 %v402_v10  ;;  %548 = vmatpush.msra.mxu3 %v495_v38  ;;  %v584_v10 = vld [vmem:[#allocation2 + $0x348] sm:$0xff]  ;;  %v690_v38 = vld [vmem:[%s881_s2 + $0x5] ss:$0 sm:$0xff] }
 0x12d   :  { %466 = vmatpush.msra.mxu1 %v401_v11  ;;  %516 = vmatpush.msra.mxu2 %v494_v41 }
 0x12e   :  { %433 = vmatpush.msra.mxu0 %v401_v11  ;;  %549 = vmatpush.msra.mxu3 %v494_v41 }
 0x12f   :  { %467 = vmatpush.msra.mxu1 %v400_v18  ;;  %517 = vmatpush.msra.mxu2 %v493_v42 }
 0x130   :  { %434 = vmatpush.msra.mxu0 %v400_v18  ;;  %550 = vmatpush.msra.mxu3 %v493_v42  ;;  %v582_v18 = vld [vmem:[#allocation2 + $0x338] sm:$0xff] }
 0x131   :  { %468 = vmatpush.msra.mxu1 %v399_v19 }
 0x132   :  { %435 = vmatpush.msra.mxu0 %v399_v19  ;;  %v581_v19 = vld [vmem:[#allocation2 + $0x330] sm:$0xff] }
 0x18e   :  { %v261_v47 = vpop.f32.mrf.mxu0 }
 0x18f   :  { %v294_v48 = vpop.f32.mrf.mxu1  ;;  %v262_v49 = vadd.f32 %v805_v43, %v261_v47 }
 0x190   :  { %v295_v50 = vadd.f32 %v805_v43, %v294_v48  ;;  %v491_v48 = vld [vmem:[#allocation2 + $0x2a0] sm:$0xff] }
 0x191   :  { %v273_v52 = vmax.f32 %v262_v49, 0.0 }
 0x192   :  { %v306_v53 = vmax.f32 %v295_v50, 0.0 }
 0x193   :  { %348 = vmatmul.f32.vlgmr.msrb.gmra.mxu2 %v273_v52  ;;  %v489_v52 = vld [vmem:[#allocation2 + $0x290] sm:$0xff] }
 0x194   :  { %381 = vmatmul.f32.vlgmr.msrb.gmra.mxu3 %v306_v53 }
 0x196   :  { %v264_v57 = vpop.f32.mrf.mxu0 }
 0x197   :  { %v297_v58 = vpop.f32.mrf.mxu1  ;;  %v265_v59 = vadd.f32 %v805_v43, %v264_v57 }
 0x198   :  { %v298_v60 = vadd.f32 %v805_v43, %v297_v58 }
 0x199   :  { %v274_v62 = vmax.f32 %v265_v59, 0.0  ;;  %v488_v59 = vld [vmem:[#allocation2 + $0x288] sm:$0xff] }
 0x19a   :  { %v307_v63 = vmax.f32 %v298_v60, 0.0  ;;  %v487_v60 = vld [vmem:[#allocation2 + $0x280] sm:$0xff] }
 0x19b   :  { %351 = vmatmul.f32.gmra.mxu2 %v274_v62  ;;  %v590_v62 = vld [vmem:[#allocation2 + $0x378] sm:$0xff] }
 0x19c   :  { %384 = vmatmul.f32.gmra.mxu3 %v307_v63  ;;  %v589_v63 = vld [vmem:[#allocation2 + $0x370] sm:$0xff]  ;;  %596 = vmatpush.msrb.mxu0 %v590_v62 }
 0x19d   :  { %625 = vmatpush.msrb.mxu1 %v590_v62 }
 0x19e   :  { %v267_v3 = vpop.f32.mrf.mxu0  ;;  %597 = vmatpush.msrb.mxu0 %v589_v63 }
 0x19f   :  { %v300_v4 = vpop.f32.mrf.mxu1  ;;  %v268_v5 = vadd.f32 %v805_v43, %v267_v3  ;;  %626 = vmatpush.msrb.mxu1 %v589_v63  ;;  %v691_v63 = vld [vmem:[%s881_s2 + $0x6] ss:$0 sm:$0xff] }
 0x1a0   :  { %v301_v6 = vadd.f32 %v805_v43, %v300_v4  ;;  %598 = vmatpush.msrb.mxu0 %v588_v0 }
 0x1a1   :  { %v275_v8 = vmax.f32 %v268_v5, 0.0  ;;  %v587_v5 = vld [vmem:[#allocation2 + $0x360] sm:$0xff]  ;;  %627 = vmatpush.msrb.mxu1 %v588_v0 }
 0x1a2   :  { %v308_v9 = vmax.f32 %v301_v6, 0.0  ;;  %599 = vmatpush.msrb.mxu0 %v587_v5 }
 0x1a3   :  { %354 = vmatmul.f32.gmra.mxu2 %v275_v8  ;;  %v586_v8 = vld [vmem:[#allocation2 + $0x358] sm:$0xff]  ;;  %628 = vmatpush.msrb.mxu1 %v587_v5 }
 0x1a4   :  { %387 = vmatmul.f32.gmra.mxu3 %v308_v9  ;;  %v585_v9 = vld [vmem:[#allocation2 + $0x350] sm:$0xff]  ;;  %600 = vmatpush.msrb.mxu0 %v586_v8 }
 0x1a5   :  { %629 = vmatpush.msrb.mxu1 %v586_v8 }
 0x1a6   :  { %v270_v12 = vpop.f32.mrf.mxu0  ;;  %601 = vmatpush.msrb.mxu0 %v585_v9 }
 0x1a7   :  { %v303_v13 = vpop.f32.mrf.mxu1  ;;  %v271_v14 = vadd.f32 %v805_v43, %v270_v12  ;;  %630 = vmatpush.msrb.mxu1 %v585_v9 }
 0x1a8   :  { %v304_v15 = vadd.f32 %v805_v43, %v303_v13  ;;  %v492_v43 = vld [vmem:[#allocation2 + $0x2a8] sm:$0xff]  ;;  %602 = vmatpush.msrb.mxu0 %v584_v10 }
 0x1a9   :  { %v276_v16 = vmax.f32 %v271_v14, 0.0  ;;  %518 = vmatpush.msra.mxu2 %v492_v43  ;;  %551 = vmatpush.msra.mxu3 %v492_v43 }
 0x1aa   :  { %v309_v17 = vmax.f32 %v304_v15, 0.0  ;;  %v583_v15 = vld [vmem:[#allocation2 + $0x340] sm:$0xff]  ;;  %631 = vmatpush.msrb.mxu1 %v584_v10 }
 0x1ab   :  { %357 = vmatmul.f32.gmra.mxu2 %v276_v16  ;;  %552 = vmatpush.msra.mxu3 %v491_v48 }
 0x1ac   :  { %390 = vmatmul.f32.gmra.mxu3 %v309_v17  ;;  %519 = vmatpush.msra.mxu2 %v491_v48 }
 0x1ad   :  { %553 = vmatpush.msra.mxu3 %v490_v51  ;;  %603 = vmatpush.msrb.mxu0 %v583_v15 }
 0x1ae   :  { %520 = vmatpush.msra.mxu2 %v490_v51  ;;  %632 = vmatpush.msrb.mxu1 %v583_v15 }
 0x1af   :  { %554 = vmatpush.msra.mxu3 %v489_v52  ;;  %604 = vmatpush.msrb.mxu0 %v582_v18 }
 0x1b0   :  { %521 = vmatpush.msra.mxu2 %v489_v52  ;;  %633 = vmatpush.msrb.mxu1 %v582_v18 }
 0x1b1   :  { %555 = vmatpush.msra.mxu3 %v488_v59  ;;  %605 = vmatpush.msrb.mxu0 %v581_v19 }
 0x1b2   :  { %522 = vmatpush.msra.mxu2 %v488_v59  ;;  %634 = vmatpush.msrb.mxu1 %v581_v19 }
 0x1b3   :  { %556 = vmatpush.msra.mxu3 %v487_v60 }
 0x1b4   :  { %523 = vmatpush.msra.mxu2 %v487_v60 }
 0x216   :  { %v349_v24 = vpop.f32.mrf.mxu2 }
 0x217   :  { %v382_v25 = vpop.f32.mrf.mxu3  ;;  %v350_v26 = vadd.f32 %v818_v20, %v349_v24 }
 0x218   :  { %v383_v27 = vadd.f32 %v818_v20, %v382_v25  ;;  %v579_v25 = vld [vmem:[#allocation2 + $0x320] sm:$0xff] }
 0x219   :  { %v361_v29 = vmax.f32 %v350_v26, 0.0 }
 0x21a   :  { %v394_v30 = vmax.f32 %v383_v27, 0.0 }
 0x21b   :  { %436 = vmatmul.f32.vlgmr.msra.gmra.mxu0 %v361_v29  ;;  %v577_v29 = vld [vmem:[#allocation2 + $0x310] sm:$0xff] }
 0x21c   :  { %469 = vmatmul.f32.vlgmr.msra.gmra.mxu1 %v394_v30 }
 0x21e   :  { %v352_v34 = vpop.f32.mrf.mxu2 }
 0x21f   :  { %v385_v35 = vpop.f32.mrf.mxu3  ;;  %v353_v36 = vadd.f32 %v818_v20, %v352_v34 }
 0x220   :  { %v386_v37 = vadd.f32 %v818_v20, %v385_v35 }
 0x221   :  { %v362_v39 = vmax.f32 %v353_v36, 0.0  ;;  %v576_v36 = vld [vmem:[#allocation2 + $0x308] sm:$0xff] }
 0x222   :  { %v395_v40 = vmax.f32 %v386_v37, 0.0  ;;  %v575_v37 = vld [vmem:[#allocation2 + $0x300] sm:$0xff] }
 0x223   :  { %439 = vmatmul.f32.gmra.mxu0 %v362_v39 }
 0x224   :  { %472 = vmatmul.f32.gmra.mxu1 %v395_v40 }
 0x226   :  { %v355_v44 = vpop.f32.mrf.mxu2 }
 0x227   :  { %v388_v45 = vpop.f32.mrf.mxu3  ;;  %v356_v46 = vadd.f32 %v818_v20, %v355_v44 }
 0x228   :  { %v389_v47 = vadd.f32 %v818_v20, %v388_v45 }
 0x229   :  { %v363_v49 = vmax.f32 %v356_v46, 0.0 }
 0x22a   :  { %v396_v50 = vmax.f32 %v389_v47, 0.0 }
 0x22b   :  { %442 = vmatmul.f32.gmra.mxu0 %v363_v49 }
 0x22c   :  { %475 = vmatmul.f32.gmra.mxu1 %v396_v50 }
 0x22e   :  { %v358_v53 = vpop.f32.mrf.mxu2 }
 0x22f   :  { %v391_v54 = vpop.f32.mrf.mxu3  ;;  %v359_v55 = vadd.f32 %v818_v20, %v358_v53 }
 0x230   :  { %v392_v56 = vadd.f32 %v818_v20, %v391_v54  ;;  %v580_v20 = vld [vmem:[#allocation2 + $0x328] sm:$0xff] }
 0x231   :  { %v364_v57 = vmax.f32 %v359_v55, 0.0  ;;  %606 = vmatpush.msrb.mxu0 %v580_v20  ;;  %635 = vmatpush.msrb.mxu1 %v580_v20 }
 0x232   :  { %v397_v58 = vmax.f32 %v392_v56, 0.0 }
 0x233   :  { %445 = vmatmul.f32.gmra.mxu0 %v364_v57  ;;  %636 = vmatpush.msrb.mxu1 %v579_v25 }
 0x234   :  { %478 = vmatmul.f32.gmra.mxu1 %v397_v58  ;;  %607 = vmatpush.msrb.mxu0 %v579_v25 }
 0x235   :  { %637 = vmatpush.msrb.mxu1 %v578_v28 }
 0x236   :  { %608 = vmatpush.msrb.mxu0 %v578_v28 }
 0x237   :  { %638 = vmatpush.msrb.mxu1 %v577_v29 }
 0x238   :  { %609 = vmatpush.msrb.mxu0 %v577_v29 }
 0x239   :  { %639 = vmatpush.msrb.mxu1 %v576_v36 }
 0x23a   :  { %610 = vmatpush.msrb.mxu0 %v576_v36 }
 0x23b   :  { %640 = vmatpush.msrb.mxu1 %v575_v37 }
 0x23c   :  { %611 = vmatpush.msrb.mxu0 %v575_v37 }
 0x298   :  { %v437_v1 = vpop.f32.mrf.mxu0 }
 0x299   :  { %v470_v2 = vpop.f32.mrf.mxu1  ;;  %v438_v3 = vadd.f32 %v831_v61, %v437_v1 }
 0x29a   :  { %v471_v4 = vadd.f32 %v831_v61, %v470_v2 }
 0x29b   :  { %v449_v6 = vmax.f32 %v438_v3, 0.0 }
 0x29c   :  { %v482_v7 = vmax.f32 %v471_v4, 0.0 }
 0x29d   :  { %524 = vmatmul.f32.vlgmr.msra.gmra.mxu2 %v449_v6 }
 0x29e   :  { %557 = vmatmul.f32.vlgmr.msra.gmra.mxu3 %v482_v7 }
 0x2a0   :  { %v440_v11 = vpop.f32.mrf.mxu0 }
 0x2a1   :  { %v473_v12 = vpop.f32.mrf.mxu1  ;;  %v441_v13 = vadd.f32 %v831_v61, %v440_v11 }
 0x2a2   :  { %v474_v14 = vadd.f32 %v831_v61, %v473_v12 }
 0x2a3   :  { %v450_v16 = vmax.f32 %v441_v13, 0.0 }
 0x2a4   :  { %v483_v17 = vmax.f32 %v474_v14, 0.0 }
 0x2a5   :  { %527 = vmatmul.f32.gmra.mxu2 %v450_v16 }
 0x2a6   :  { %560 = vmatmul.f32.gmra.mxu3 %v483_v17 }
 0x2a8   :  { %v443_v21 = vpop.f32.mrf.mxu0 }
 0x2a9   :  { %v476_v22 = vpop.f32.mrf.mxu1  ;;  %v444_v23 = vadd.f32 %v831_v61, %v443_v21 }
 0x2aa   :  { %v477_v24 = vadd.f32 %v831_v61, %v476_v22 }
 0x2ab   :  { %v451_v26 = vmax.f32 %v444_v23, 0.0 }
 0x2ac   :  { %v484_v27 = vmax.f32 %v477_v24, 0.0 }
 0x2ad   :  { %530 = vmatmul.f32.gmra.mxu2 %v451_v26 }
 0x2ae   :  { %563 = vmatmul.f32.gmra.mxu3 %v484_v27 }
 0x2b0   :  { %v446_v30 = vpop.f32.mrf.mxu0 }
 0x2b1   :  { %v479_v31 = vpop.f32.mrf.mxu1  ;;  %v447_v32 = vadd.f32 %v831_v61, %v446_v30 }
 0x2b2   :  { %v480_v33 = vadd.f32 %v831_v61, %v479_v31 }
 0x2b3   :  { %v452_v34 = vmax.f32 %v447_v32, 0.0 }
 0x2b4   :  { %v485_v35 = vmax.f32 %v480_v33, 0.0 }
 0x2b5   :  { %533 = vmatmul.f32.gmra.mxu2 %v452_v34 }
 0x2b6   :  { %566 = vmatmul.f32.gmra.mxu3 %v485_v35 }
 0x320   :  { %v525_v39 = vpop.f32.mrf.mxu2 }
 0x321   :  { %v558_v40 = vpop.f32.mrf.mxu3  ;;  %v526_v41 = vadd.f32 %v690_v38, %v525_v39 }
 0x322   :  { %v559_v42 = vadd.f32 %v690_v38, %v558_v40 }
 0x323   :  { %v537_v43 = vmax.f32 %v526_v41, 0.0 }
 0x324   :  { %v570_v44 = vmax.f32 %v559_v42, 0.0 }
 0x325   :  { %612 = vmatmul.f32.vlgmr.msrb.gmra.mxu0 %v537_v43 }
 0x326   :  { %641 = vmatmul.f32.vlgmr.msrb.gmra.mxu1 %v570_v44 }
 0x328   :  { %v528_v45 = vpop.f32.mrf.mxu2 }
 0x329   :  { %v561_v46 = vpop.f32.mrf.mxu3  ;;  %v529_v47 = vadd.f32 %v690_v38, %v528_v45 }
 0x32a   :  { %v562_v48 = vadd.f32 %v690_v38, %v561_v46 }
 0x32b   :  { %v538_v49 = vmax.f32 %v529_v47, 0.0 }
 0x32c   :  { %v571_v50 = vmax.f32 %v562_v48, 0.0 }
 0x32d   :  { %615 = vmatmul.f32.gmra.mxu0 %v538_v49 }
 0x32e   :  { %644 = vmatmul.f32.gmra.mxu1 %v571_v50 }
 0x330   :  { %v531_v51 = vpop.f32.mrf.mxu2 }
 0x331   :  { %v564_v52 = vpop.f32.mrf.mxu3  ;;  %v532_v53 = vadd.f32 %v690_v38, %v531_v51 }
 0x332   :  { %v565_v54 = vadd.f32 %v690_v38, %v564_v52 }
 0x333   :  { %v539_v55 = vmax.f32 %v532_v53, 0.0 }
 0x334   :  { %v572_v56 = vmax.f32 %v565_v54, 0.0 }
 0x335   :  { %618 = vmatmul.f32.gmra.mxu0 %v539_v55 }
 0x336   :  { %647 = vmatmul.f32.gmra.mxu1 %v572_v56 }
 0x338   :  { %v534_v57 = vpop.f32.mrf.mxu2 }
 0x339   :  { %v567_v58 = vpop.f32.mrf.mxu3  ;;  %v535_v59 = vadd.f32 %v690_v38, %v534_v57 }
 0x33a   :  { %v568_v60 = vadd.f32 %v690_v38, %v567_v58 }
 0x33b   :  { %v540_v61 = vmax.f32 %v535_v59, 0.0 }
 0x33c   :  { %v573_v62 = vmax.f32 %v568_v60, 0.0 }
 0x33d   :  { %621 = vmatmul.f32.gmra.mxu0 %v540_v61 }
 0x33e   :  { %650 = vmatmul.f32.gmra.mxu1 %v573_v62 }
 0x3a2   :  { %v613_v0 = vpop.f32.mrf.mxu0 }
 0x3a3   :  { %v642_v1 = vpop.f32.mrf.mxu1  ;;  %v614_v2 = vadd.f32 %v691_v63, %v613_v0 }
 0x3a4   :  { %v643_v3 = vadd.f32 %v691_v63, %v642_v1 }
 0x3a5   :  { %655 = vst.msk [vmem:[%s882_s3] sm:$0xff] %vm654_vm1, %v614_v2 }
 0x3a6   :  { %659 = vst.msk [vmem:[%s882_s3 + $0x20] sm:$0xff] %vm654_vm1, %v643_v3 }
 0x3aa   :  { %v616_v4 = vpop.f32.mrf.mxu0 }
 0x3ab   :  { %v645_v5 = vpop.f32.mrf.mxu1  ;;  %v617_v6 = vadd.f32 %v691_v63, %v616_v4 }
 0x3ac   :  { %v646_v7 = vadd.f32 %v691_v63, %v645_v5 }
 0x3ad   :  { %656 = vst.msk [vmem:[%s882_s3 + $0x8] sm:$0xff] %vm654_vm1, %v617_v6 }
 0x3ae   :  { %660 = vst.msk [vmem:[%s882_s3 + $0x28] sm:$0xff] %vm654_vm1, %v646_v7 }
 0x3b2   :  { %v619_v8 = vpop.f32.mrf.mxu0 }
 0x3b3   :  { %v648_v9 = vpop.f32.mrf.mxu1  ;;  %v620_v10 = vadd.f32 %v691_v63, %v619_v8 }
 0x3b4   :  { %v649_v11 = vadd.f32 %v691_v63, %v648_v9 }
 0x3b5   :  { %657 = vst.msk [vmem:[%s882_s3 + $0x10] sm:$0xff] %vm654_vm1, %v620_v10 }
 0x3b6   :  { %661 = vst.msk [vmem:[%s882_s3 + $0x30] sm:$0xff] %vm654_vm1, %v649_v11 }
 0x3ba   :  { %v622_v12 = vpop.f32.mrf.mxu0 }
 0x3bb   :  { %v651_v13 = vpop.f32.mrf.mxu1  ;;  %v623_v14 = vadd.f32 %v691_v63, %v622_v12 }
 0x3bc   :  { %v652_v15 = vadd.f32 %v691_v63, %v651_v13 }
 0x3bd   :  { %658 = vst.msk [vmem:[%s882_s3 + $0x18] sm:$0xff] %vm654_vm1, %v623_v14 }
 0x3be   :  { %662 = vst.msk [vmem:[%s882_s3 + $0x38] sm:$0xff] %vm654_vm1, %v652_v15 }
 0x3bf   :  { %667 = vsyncpa [#allocation3], 1 }

</bundles_post_ra>
